<compile_context>
chip_gen: v7x
topology: tpu7x:2x2x1
jax: 0.10.0
libtpu: 0.0.40
codegen_flags: <defaults>
</compile_context>

<pallas_src>
import functools

import jax
import jax.numpy as jnp
from jax.experimental import pallas as pl
from jax.experimental.pallas import tpu as pltpu


def _coupling_kernel(*refs, reverse, swap, has_logpx):
    """One batch tile, feature-major layout (features on sublanes, batch on lanes).

    x1: (in_dim, TB)       x2: (out_dim, TB)      [logpx: (1, TB)]
    w1: (H, in_dim)        b1: (H, 1)
    w2: (H, H)             b2: (H, 1)
    w3s/w3h: (out_dim, H)  b3s/b3h: (out_dim, 1)  (b3s already includes +2.0)
    y:  (in_dim + out_dim, TB)   lp_out: (1, TB)  (delta_logp, or logpx+delta)
    """
    if has_logpx:
        (x1_ref, x2_ref, lp_ref, w1_ref, b1_ref, w2_ref, b2_ref,
         w3s_ref, b3s_ref, w3h_ref, b3h_ref, y_ref, lp_out_ref) = refs
    else:
        (x1_ref, x2_ref, w1_ref, b1_ref, w2_ref, b2_ref,
         w3s_ref, b3s_ref, w3h_ref, b3h_ref, y_ref, lp_out_ref) = refs
        lp_ref = None

    in_dim = x1_ref.shape[0]
    out_dim = x2_ref.shape[0]
    x1 = x1_ref[...]
    x2 = x2_ref[...]

    # net_s_t: Linear -> ReLU -> Linear -> ReLU -> (Linear split into scale/shift)
    h = jnp.dot(w1_ref[...], x1, preferred_element_type=jnp.float32) + b1_ref[...]
    h = jnp.maximum(h, 0.0)
    h = jnp.dot(w2_ref[...], h, preferred_element_type=jnp.float32) + b2_ref[...]
    h = jnp.maximum(h, 0.0)

    z = jnp.dot(w3s_ref[...], h, preferred_element_type=jnp.float32) + b3s_ref[...]
    shift = jnp.dot(w3h_ref[...], h, preferred_element_type=jnp.float32) + b3h_ref[...]

    # log(sigmoid(z)) computed stably: min(z,0) - log(1 + exp(-|z|)); never -inf.
    log_scale = jnp.minimum(z, 0.0) - jnp.log(1.0 + jnp.exp(-jnp.abs(z)))
    logdet = jnp.sum(log_scale, axis=0, keepdims=True)      # (1, TB)
    delta = logdet if reverse else -logdet
    lp_out_ref[...] = (lp_ref[...] + delta) if has_logpx else delta

    if not reverse:
        scale = jnp.exp(log_scale)           # == sigmoid(z)
        y1 = x2 * scale + shift
    else:
        inv_scale = 1.0 + jnp.exp(-z)        # == 1 / sigmoid(z), exact, EUP only
        y1 = (x2 - shift) * inv_scale

    # Write the full-width (transposed) output, including the x1 pass-through,
    # so no concatenate is needed in the wrapper.  Lane axis is always dense.
    if not swap:
        y_ref[:in_dim, :] = x1
        y_ref[in_dim:, :] = y1
    else:
        y_ref[:out_dim, :] = y1
        y_ref[out_dim:, :] = x1


def _prepare_kernel_params(params, out_dim):
    """PyTorch-layout params -> transposed/split kernel params (+2 folded into b3s)."""
    w1, b1, w2, b2, w3, b3 = params
    w1t = jnp.asarray(w1, jnp.float32).T
    b1t = jnp.asarray(b1, jnp.float32).reshape(-1, 1)
    w2t = jnp.asarray(w2, jnp.float32).T
    b2t = jnp.asarray(b2, jnp.float32).reshape(-1, 1)
    w3t = jnp.asarray(w3, jnp.float32).T            # (2*out_dim, H)
    b3t = jnp.asarray(b3, jnp.float32).reshape(-1, 1)
    w3s = w3t[:out_dim]
    w3h = w3t[out_dim:]
    b3s = b3t[:out_dim] + 2.0                       # fold sigmoid(s + 2.0) shift
    b3h = b3t[out_dim:]
    return (w1t, b1t, w2t, b2t, w3s, b3s, w3h, b3h)


def _run_coupling_kernel(x1t, x2t, logpxT, kparams, reverse, swap, block_b):
    in_dim, B = x1t.shape
    out_dim = x2t.shape[0]
    D = in_dim + out_dim
    has_logpx = logpxT is not None
    w1t, b1t, w2t, b2t, w3s, b3s, w3h, b3h = kparams

    # Lane-axis batch tile: multiple of 128, or the full batch if it is smaller.
    TB = min(block_b, B)
    grid = (pl.cdiv(B, TB),)

    def batch_spec(rows):
        return pl.BlockSpec((rows, TB), lambda i: (0, i))

    def resident_spec(a):  # whole-array block, same index every step -> stays in VMEM
        return pl.BlockSpec(a.shape, lambda i: (0, 0))

    in_specs = [batch_spec(in_dim), batch_spec(out_dim)]
    inputs = [x1t, x2t]
    if has_logpx:
        in_specs.append(batch_spec(1))
        inputs.append(logpxT)
    weights = (w1t, b1t, w2t, b2t, w3s, b3s, w3h, b3h)
    in_specs += [resident_spec(a) for a in weights]
    inputs += list(weights)

    out_specs = (batch_spec(D), batch_spec(1))
    out_shape = (jax.ShapeDtypeStruct((D, B), jnp.float32),
                 jax.ShapeDtypeStruct((1, B), jnp.float32))

    kernel = functools.partial(_coupling_kernel, reverse=reverse, swap=swap,
                               has_logpx=has_logpx)
    yT, lpT = pl.pallas_call(
        kernel,
        grid=grid,
        in_specs=in_specs,
        out_specs=out_specs,
        out_shape=out_shape,
        compiler_params=pltpu.CompilerParams(
            dimension_semantics=("parallel",)),
    )(*inputs)
    return yT, lpT


def coupling_layer_forward(x, params, logpx=None, swap=False, reverse=False,
                           block_b=1024):
    """Mirror of CouplingLayer.forward (d inferred from x.shape[1])."""
    B, D = x.shape
    in_dim = D - D // 2            # self.d
    if swap:
        x = jnp.concatenate([x[:, in_dim:], x[:, :in_dim]], axis=1)
    out_dim = D - in_dim

    # Single wrapper-side transpose to feature-major: batch on the lane axis.
    xT = x.T                        # (D, B)
    x1t = xT[:in_dim]               # (in_dim, B)
    x2t = xT[in_dim:]               # (out_dim, B)
    logpxT = None if logpx is None else jnp.asarray(logpx, jnp.float32).reshape(B, 1).T

    kparams = _prepare_kernel_params(params, out_dim)
    yT, lpT = _run_coupling_kernel(x1t, x2t, logpxT, kparams, reverse, swap, block_b)

    y = yT.T                        # (B, D)
    if logpx is None:
        return y
    return y, lpT.reshape(B, 1)     # logpx + delta_logp already fused in-kernel


def init_coupling_params(key, d, intermediate_dim=64):
    """Deterministic init matching nn.Linear default (uniform +-1/sqrt(fan_in))."""
    in_dim = d - d // 2
    out_dim = d - in_dim
    H = intermediate_dim
    dims = [(in_dim, H), (H, H), (H, 2 * out_dim)]
    params = []
    for (fan_in, fan_out) in dims:
        key, kw, kb = jax.random.split(key, 3)
        bound = 1.0 / (fan_in ** 0.5)
        W = jax.random.uniform(kw, (fan_in, fan_out), jnp.float32, -bound, bound)
        b = jax.random.uniform(kb, (1, fan_out), jnp.float32, -bound, bound)
        params.extend([W, b])
    return tuple(params)


def _reference_forward(x, params, logpx=None, swap=False, reverse=False):
    """Pure-JAX reference of the PyTorch module for correctness checks."""
    D = x.shape[1]
    in_dim = D - D // 2
    if swap:
        x = jnp.concatenate([x[:, in_dim:], x[:, :in_dim]], axis=1)
    out_dim = D - in_dim
    w1, b1, w2, b2, w3, b3 = params
    h = jnp.maximum(x[:, :in_dim] @ w1 + b1, 0.0)
    h = jnp.maximum(h @ w2 + b2, 0.0)
    s_t = h @ w3 + b3
    scale = jax.nn.sigmoid(s_t[:, :out_dim] + 2.0)
    shift = s_t[:, out_dim:]
    logdetjac = jnp.sum(jnp.log(scale), axis=1, keepdims=True)
    if not reverse:
        y1 = x[:, in_dim:] * scale + shift
        delta = -logdetjac
    else:
        y1 = (x[:, in_dim:] - shift) / scale
        delta = logdetjac
    y = (jnp.concatenate([x[:, :in_dim], y1], 1) if not swap
         else jnp.concatenate([y1, x[:, :in_dim]], 1))
    if logpx is None:
        return y
    return y, logpx + delta


if __name__ == "__main__":
    B, D, H = 256, 4, 64   # batch, feature dim d, intermediate_dim
    key = jax.random.PRNGKey(0)
    kx, kl, kp = jax.random.split(key, 3)

    x = jax.random.normal(kx, (B, D), jnp.float32)
    logpx = jax.random.normal(kl, (B, 1), jnp.float32)
    params = init_coupling_params(kp, D, intermediate_dim=H)

    # forward (non-reverse, swap=False) with logpx; block_b=128 -> grid=2 (pipelined)
    y, new_logpx = coupling_layer_forward(x, params, logpx=logpx,
                                          swap=False, reverse=False, block_b=128)
    jax.block_until_ready(y)
    jax.block_until_ready(new_logpx)

    # also exercise swap=True / reverse=True path (default block_b -> single block)
    y_sw = coupling_layer_forward(x, params, swap=True, reverse=True)
    jax.block_until_ready(y_sw)

    # correctness vs pure-JAX reference
    y_exp, lp_exp = _reference_forward(x, params, logpx=logpx,
                                       swap=False, reverse=False)
    y_sw_exp = _reference_forward(x, params, swap=True, reverse=True)
    assert jnp.allclose(y, y_exp, atol=1e-5, rtol=1e-5)
    assert jnp.allclose(new_logpx, lp_exp, atol=1e-5, rtol=1e-5)
    assert jnp.allclose(y_sw, y_sw_exp, atol=1e-5, rtol=1e-5)

    print("KERNEL_OK")
</pallas_src>

<mosaic_0001>
module attributes {stable_mosaic.version = 11 : i64} {
  func.func @_coupling_kernel(%arg0: i32, %arg1: memref<2x128xf32, #tpu.memory_space<vmem>>, %arg2: memref<2x128xf32, #tpu.memory_space<vmem>>, %arg3: memref<1x128xf32, #tpu.memory_space<vmem>>, %arg4: memref<64x2xf32, #tpu.memory_space<vmem>>, %arg5: memref<64x1xf32, #tpu.memory_space<vmem>>, %arg6: memref<64x64xf32, #tpu.memory_space<vmem>>, %arg7: memref<64x1xf32, #tpu.memory_space<vmem>>, %arg8: memref<2x64xf32, #tpu.memory_space<vmem>>, %arg9: memref<2x1xf32, #tpu.memory_space<vmem>>, %arg10: memref<2x64xf32, #tpu.memory_space<vmem>>, %arg11: memref<2x1xf32, #tpu.memory_space<vmem>>, %arg12: memref<4x128xf32, #tpu.memory_space<vmem>>, %arg13: memref<1x128xf32, #tpu.memory_space<vmem>>) attributes {dimension_semantics = [#tpu.dimension_semantics<parallel>], iteration_bounds = array<i64: 2>, scalar_prefetch = 0 : i64, scratch_operands = 0 : i64, tpu.core_type = #tpu.core_type<tc>, window_params = [{transform_indices = @transform_0, window_bounds = array<i64: 2, 128>}, {transform_indices = @transform_1, window_bounds = array<i64: 2, 128>}, {transform_indices = @transform_2, window_bounds = array<i64: 1, 128>}, {pipeline_mode = #tpu.pipeline_mode<synchronous>, transform_indices = @transform_3, window_bounds = array<i64: 64, 2>}, {pipeline_mode = #tpu.pipeline_mode<synchronous>, transform_indices = @transform_4, window_bounds = array<i64: 64, 1>}, {pipeline_mode = #tpu.pipeline_mode<synchronous>, transform_indices = @transform_5, window_bounds = array<i64: 64, 64>}, {pipeline_mode = #tpu.pipeline_mode<synchronous>, transform_indices = @transform_6, window_bounds = array<i64: 64, 1>}, {pipeline_mode = #tpu.pipeline_mode<synchronous>, transform_indices = @transform_7, window_bounds = array<i64: 2, 64>}, {pipeline_mode = #tpu.pipeline_mode<synchronous>, transform_indices = @transform_8, window_bounds = array<i64: 2, 1>}, {pipeline_mode = #tpu.pipeline_mode<synchronous>, transform_indices = @transform_9, window_bounds = array<i64: 2, 64>}, {pipeline_mode = #tpu.pipeline_mode<synchronous>, transform_indices = @transform_10, window_bounds = array<i64: 2, 1>}, {transform_indices = @transform_11, window_bounds = array<i64: 4, 128>}, {transform_indices = @transform_12, window_bounds = array<i64: 1, 128>}]} {
    %c0 = arith.constant 0 : index
    %c0_0 = arith.constant 0 : index
    %0 = vector.load %arg1[%c0, %c0_0] : memref<2x128xf32, #tpu.memory_space<vmem>>, vector<2x128xf32>
    %c0_1 = arith.constant 0 : index
    %c0_2 = arith.constant 0 : index
    %1 = vector.load %arg2[%c0_1, %c0_2] : memref<2x128xf32, #tpu.memory_space<vmem>>, vector<2x128xf32>
    %c0_3 = arith.constant 0 : index
    %c0_4 = arith.constant 0 : index
    %2 = vector.load %arg4[%c0_3, %c0_4] : memref<64x2xf32, #tpu.memory_space<vmem>>, vector<64x2xf32>
    %cst = arith.constant dense<0.000000e+00> : vector<64x128xf32>
    %3 = tpu.matmul %2, %0, %cst {dimension_numbers = #tpu.dot_dimension_numbers<[1], [0], [0], [1], [0, 0, 1, 1], [], []>} : vector<64x2xf32>, vector<2x128xf32>, vector<64x128xf32> -> vector<64x128xf32>
    %c0_5 = arith.constant 0 : index
    %c0_6 = arith.constant 0 : index
    %4 = vector.load %arg5[%c0_5, %c0_6] : memref<64x1xf32, #tpu.memory_space<vmem>>, vector<64x1xf32>
    %5 = vector.broadcast %4 : vector<64x1xf32> to vector<64x128xf32>
    %6 = arith.addf %3, %5 : vector<64x128xf32>
    %cst_7 = arith.constant 0.000000e+00 : f32
    %7 = vector.broadcast %cst_7 : f32 to vector<64x128xf32>
    %8 = arith.maximumf %6, %7 : vector<64x128xf32>
    %c0_8 = arith.constant 0 : index
    %c0_9 = arith.constant 0 : index
    %9 = vector.load %arg6[%c0_8, %c0_9] : memref<64x64xf32, #tpu.memory_space<vmem>>, vector<64x64xf32>
    %cst_10 = arith.constant dense<0.000000e+00> : vector<64x128xf32>
    %10 = tpu.matmul %9, %8, %cst_10 {dimension_numbers = #tpu.dot_dimension_numbers<[1], [0], [0], [1], [0, 0, 1, 1], [], []>} : vector<64x64xf32>, vector<64x128xf32>, vector<64x128xf32> -> vector<64x128xf32>
    %c0_11 = arith.constant 0 : index
    %c0_12 = arith.constant 0 : index
    %11 = vector.load %arg7[%c0_11, %c0_12] : memref<64x1xf32, #tpu.memory_space<vmem>>, vector<64x1xf32>
    %12 = vector.broadcast %11 : vector<64x1xf32> to vector<64x128xf32>
    %13 = arith.addf %10, %12 : vector<64x128xf32>
    %cst_13 = arith.constant 0.000000e+00 : f32
    %14 = vector.broadcast %cst_13 : f32 to vector<64x128xf32>
    %15 = arith.maximumf %13, %14 : vector<64x128xf32>
    %c0_14 = arith.constant 0 : index
    %c0_15 = arith.constant 0 : index
    %16 = vector.load %arg8[%c0_14, %c0_15] : memref<2x64xf32, #tpu.memory_space<vmem>>, vector<2x64xf32>
    %cst_16 = arith.constant dense<0.000000e+00> : vector<2x128xf32>
    %17 = tpu.matmul %16, %15, %cst_16 {dimension_numbers = #tpu.dot_dimension_numbers<[1], [0], [0], [1], [0, 0, 1, 1], [], []>} : vector<2x64xf32>, vector<64x128xf32>, vector<2x128xf32> -> vector<2x128xf32>
    %c0_17 = arith.constant 0 : index
    %c0_18 = arith.constant 0 : index
    %18 = vector.load %arg9[%c0_17, %c0_18] : memref<2x1xf32, #tpu.memory_space<vmem>>, vector<2x1xf32>
    %19 = vector.broadcast %18 : vector<2x1xf32> to vector<2x128xf32>
    %20 = arith.addf %17, %19 : vector<2x128xf32>
    %c0_19 = arith.constant 0 : index
    %c0_20 = arith.constant 0 : index
    %21 = vector.load %arg10[%c0_19, %c0_20] : memref<2x64xf32, #tpu.memory_space<vmem>>, vector<2x64xf32>
    %cst_21 = arith.constant dense<0.000000e+00> : vector<2x128xf32>
    %22 = tpu.matmul %21, %15, %cst_21 {dimension_numbers = #tpu.dot_dimension_numbers<[1], [0], [0], [1], [0, 0, 1, 1], [], []>} : vector<2x64xf32>, vector<64x128xf32>, vector<2x128xf32> -> vector<2x128xf32>
    %c0_22 = arith.constant 0 : index
    %c0_23 = arith.constant 0 : index
    %23 = vector.load %arg11[%c0_22, %c0_23] : memref<2x1xf32, #tpu.memory_space<vmem>>, vector<2x1xf32>
    %24 = vector.broadcast %23 : vector<2x1xf32> to vector<2x128xf32>
    %25 = arith.addf %22, %24 : vector<2x128xf32>
    %cst_24 = arith.constant 0.000000e+00 : f32
    %26 = vector.broadcast %cst_24 : f32 to vector<2x128xf32>
    %27 = arith.minimumf %20, %26 : vector<2x128xf32>
    %28 = math.absf %20 : vector<2x128xf32>
    %cst_25 = arith.constant 0.000000e+00 : f32
    %29 = vector.broadcast %cst_25 : f32 to vector<2x128xf32>
    %30 = arith.subf %29, %28 : vector<2x128xf32>
    %31 = math.exp %30 : vector<2x128xf32>
    %cst_26 = arith.constant 1.000000e+00 : f32
    %32 = vector.broadcast %cst_26 : f32 to vector<2x128xf32>
    %33 = arith.addf %32, %31 : vector<2x128xf32>
    %34 = math.log %33 : vector<2x128xf32>
    %35 = arith.subf %27, %34 : vector<2x128xf32>
    %cst_27 = arith.constant dense<0.000000e+00> : vector<128xf32>
    %36 = vector.multi_reduction <add>, %35, %cst_27 [0] : vector<2x128xf32> to vector<128xf32>
    %37 = vector.shape_cast %36 : vector<128xf32> to vector<1x128xf32>
    %cst_28 = arith.constant 0.000000e+00 : f32
    %38 = vector.broadcast %cst_28 : f32 to vector<1x128xf32>
    %39 = arith.subf %38, %37 : vector<1x128xf32>
    %c0_29 = arith.constant 0 : index
    %c0_30 = arith.constant 0 : index
    %40 = vector.load %arg3[%c0_29, %c0_30] : memref<1x128xf32, #tpu.memory_space<vmem>>, vector<1x128xf32>
    %41 = arith.addf %40, %39 : vector<1x128xf32>
    %c0_31 = arith.constant 0 : index
    %c0_32 = arith.constant 0 : index
    %42 = vector.load %arg13[%c0_31, %c0_32] : memref<1x128xf32, #tpu.memory_space<vmem>>, vector<1x128xf32>
    tpu.vector_store %arg13[%c0_31, %c0_32], %41 {strides = array<i32>} : memref<1x128xf32, #tpu.memory_space<vmem>>, vector<1x128xf32>,
    %43 = math.exp %35 : vector<2x128xf32>
    %44 = arith.mulf %1, %43 : vector<2x128xf32>
    %45 = arith.addf %44, %25 : vector<2x128xf32>
    %c0_33 = arith.constant 0 : index
    %c0_34 = arith.constant 0 : index
    %46 = vector.load %arg12[%c0_33, %c0_34] : memref<4x128xf32, #tpu.memory_space<vmem>>, vector<2x128xf32>
    tpu.vector_store %arg12[%c0_33, %c0_34], %0 {strides = array<i32>} : memref<4x128xf32, #tpu.memory_space<vmem>>, vector<2x128xf32>,
    %c2 = arith.constant 2 : index
    %c0_35 = arith.constant 0 : index
    %47 = vector.load %arg12[%c2, %c0_35] : memref<4x128xf32, #tpu.memory_space<vmem>>, vector<2x128xf32>
    tpu.vector_store %arg12[%c2, %c0_35], %45 {strides = array<i32>} : memref<4x128xf32, #tpu.memory_space<vmem>>, vector<2x128xf32>,
    return
  }
  func.func @transform_0(%arg0: i32) -> (i32, i32) {
    %c0_i32 = arith.constant 0 : i32
    %c0_i32_0 = arith.constant 0 : i32
    return %c0_i32, %arg0 : i32, i32
  }
  func.func @transform_1(%arg0: i32) -> (i32, i32) {
    %c0_i32 = arith.constant 0 : i32
    %c0_i32_0 = arith.constant 0 : i32
    return %c0_i32, %arg0 : i32, i32
  }
  func.func @transform_2(%arg0: i32) -> (i32, i32) {
    %c0_i32 = arith.constant 0 : i32
    %c0_i32_0 = arith.constant 0 : i32
    return %c0_i32, %arg0 : i32, i32
  }
  func.func @transform_3(%arg0: i32) -> (i32, i32) {
    %c0_i32 = arith.constant 0 : i32
    %c0_i32_0 = arith.constant 0 : i32
    %c0_i32_1 = arith.constant 0 : i32
    return %c0_i32, %c0_i32_0 : i32, i32
  }
  func.func @transform_4(%arg0: i32) -> (i32, i32) {
    %c0_i32 = arith.constant 0 : i32
    %c0_i32_0 = arith.constant 0 : i32
    %c0_i32_1 = arith.constant 0 : i32
    return %c0_i32, %c0_i32_0 : i32, i32
  }
  func.func @transform_5(%arg0: i32) -> (i32, i32) {
    %c0_i32 = arith.constant 0 : i32
    %c0_i32_0 = arith.constant 0 : i32
    %c0_i32_1 = arith.constant 0 : i32
    return %c0_i32, %c0_i32_0 : i32, i32
  }
  func.func @transform_6(%arg0: i32) -> (i32, i32) {
    %c0_i32 = arith.constant 0 : i32
    %c0_i32_0 = arith.constant 0 : i32
    %c0_i32_1 = arith.constant 0 : i32
    return %c0_i32, %c0_i32_0 : i32, i32
  }
  func.func @transform_7(%arg0: i32) -> (i32, i32) {
    %c0_i32 = arith.constant 0 : i32
    %c0_i32_0 = arith.constant 0 : i32
    %c0_i32_1 = arith.constant 0 : i32
    return %c0_i32, %c0_i32_0 : i32, i32
  }
  func.func @transform_8(%arg0: i32) -> (i32, i32) {
    %c0_i32 = arith.constant 0 : i32
    %c0_i32_0 = arith.constant 0 : i32
    %c0_i32_1 = arith.constant 0 : i32
    return %c0_i32, %c0_i32_0 : i32, i32
  }
  func.func @transform_9(%arg0: i32) -> (i32, i32) {
    %c0_i32 = arith.constant 0 : i32
    %c0_i32_0 = arith.constant 0 : i32
    %c0_i32_1 = arith.constant 0 : i32
    return %c0_i32, %c0_i32_0 : i32, i32
  }
  func.func @transform_10(%arg0: i32) -> (i32, i32) {
    %c0_i32 = arith.constant 0 : i32
    %c0_i32_0 = arith.constant 0 : i32
    %c0_i32_1 = arith.constant 0 : i32
    return %c0_i32, %c0_i32_0 : i32, i32
  }
  func.func @transform_11(%arg0: i32) -> (i32, i32) {
    %c0_i32 = arith.constant 0 : i32
    %c0_i32_0 = arith.constant 0 : i32
    return %c0_i32, %arg0 : i32, i32
  }
  func.func @transform_12(%arg0: i32) -> (i32, i32) {
    %c0_i32 = arith.constant 0 : i32
    %c0_i32_0 = arith.constant 0 : i32
    return %c0_i32, %arg0 : i32, i32
  }
}

</mosaic_0001>

<bundles_post_ra>
// kernel: tpu_custom_call.1
= control target key start
LH: loop header
LB: loop body
LE: loop exit
PB: predicated region body
PF: predicated region fallthrough
CT: control target
= control target key end

     0   :  { %18 = vsyncpa [#allocation3], 0  ;;  %s1869_s0 = inlined_call_operand.vmem [shape: f32[2,256], index: 0, kind: input, shape index: {}]   ;;  %s1870_s1 = inlined_call_operand.vmem [shape: f32[2,256], index: 1, kind: input, shape index: {}]   ;;  %s1871_s2 = inlined_call_operand.vmem [shape: f32[1,256], index: 2, kind: input, shape index: {}]   ;;  %s1872_s3 = inlined_call_operand.vmem [shape: f32[64,2], index: 3, kind: input, shape index: {}]   ;;  %s1873_s4 = inlined_call_operand.vmem [shape: f32[64,1], index: 4, kind: input, shape index: {}]   ;;  %s1874_s5 = inlined_call_operand.vmem [shape: f32[64,64], index: 5, kind: input, shape index: {}]   ;;  %s1875_s6 = inlined_call_operand.vmem [shape: f32[64,1], index: 6, kind: input, shape index: {}]   ;;  %s1876_s7 = inlined_call_operand.vmem [shape: f32[2,64], index: 7, kind: input, shape index: {}]   ;;  %s1877_s8 = inlined_call_operand.vmem [shape: f32[2,1], index: 8, kind: input, shape index: {}]   ;;  %s1878_s9 = inlined_call_operand.vmem [shape: f32[2,64], index: 9, kind: input, shape index: {}]   ;;  %s1879_s10 = inlined_call_operand.vmem [shape: f32[2,1], index: 10, kind: input, shape index: {}]   ;;  %s1880_s11 = inlined_call_operand.hbm [shape: f32[4,256], index: 11, kind: output, shape index: {0}]   ;;  %s1881_s12 = inlined_call_operand.hbm [shape: f32[1,256], index: 12, kind: output, shape index: {1}]  }
   0x1   :  { %20 = vsyncpa [#allocation3 + $0x1], 0 }
   0x2   :  { %21 = vsyncpa [#allocation5], 0 }
   0x3   :  { %23 = vsyncpa [#allocation5 + $0x1], 0  ;;  %s1586_s21 = smov 0   ;;  %s1588_s22 = smov 0  }
   0x4   :  { %s1590_s23 = smov 0   ;;  %s1592_s24 = smov 0  }
   0x5 LB: > { %1887 = sst [smem:[#allocation8_spill]] %s1505_s22  ;;  %s1607_s25 = sadd.s32 4294967295, %s1513_s24   ;;  %s1513_s24 = sphi %s1592_s24, %s1895_s24   ;;  %s1509_s23 = sphi %s1590_s23, %s1898_s23   ;;  %s1505_s22 = sphi %s1588_s22, %s1897_s22   ;;  %s1501_s21 = sphi %s1586_s21, %s1896_s21  }
   0x6   : > { %1888 = sst [smem:[#allocation9_spill]] %s1509_s23  ;;  %s1169_s26 = sadd.s32 4294967294, %s1513_s24  }
   0x7   : > { %s1611_s27 = sadd.s32 1, %s1513_s24   ;;  %s282_s28 = sadd.s32 1, %s1509_s23 }
   0x8   : > { %1889 = sst [smem:[#allocation10_spill]] %s1611_s27  ;;  %s279_s29 = ssub.s32 %s1513_s24, %s1611_s27 }
   0x9   : > { %p292_p0 = scmp.ne.s32.totalorder %s1509_s23, %s1505_s22  ;;  %p280_p1 = scmp.eq.s32.totalorder %s279_s29, 0 }
   0xa   : > { %p293_p2 = scmp.eq.s32.totalorder %s1607_s25, 1  ;;  %p298_p3 = scmp.ne.s32.totalorder %s1505_s22, %s1501_s21 }
   0xb   : > { %p299_p4 = scmp.eq.s32.totalorder %s1169_s26, 1  ;;  %p1172_p7 = scmp.ge.s32.totalorder %s1513_s24, 1 }
   0xc   : > { %s1622_s30 = scalar_select %p280_p1, %s1509_s23, %s282_s28  }
   0xd   : > { %p1624_p5 = por %p293_p2, %p292_p0  ;;  %p1628_p6 = por %p299_p4, %p298_p3 }
   0xe   : > { %1890 = sst [smem:[#allocation11_spill]] %s1622_s30  ;;  %p387_p8 = scmp.lt.s32.totalorder %s1513_s24, 3 }
   0xf   : > { %s1892_s14 = scalar_select %p1628_p6, 1, 0 }
  0x10   : > { %p388_p9 = pnand %p1172_p7, %p387_p8 }
  0x11   : > { %1893 = sst [smem:[#allocation12_spill]] %s1892_s14  ;;  %s1635_s15 = sand.u32 (!%p388_p9), 1, %s1505_s22   ;;  %v452_v0 = vld [vmem:[%s1872_s3] sm:$0xff] (!%p388_p9)  ;;  %vm508_vm0 = vcmask (!%p388_p9), 15360   ;;  %v1515_v1 = vmov (!%p388_p9), 0   ;;  %v462_v3 = vld [vmem:[%s1873_s4 + $0x10] sm:$0xff] (!%p388_p9) }
  0x12   : > { %391 = sbr.rel (%p388_p9) target bundleno = 803 (0x323), region = 64  ;;  %p439_p10 = scmp.lt.s32.totalorder (!%p388_p9), %s1607_s25, 1  ;;  %1245 = vmatprep.mubr.msk.f32.mxu0 (!%p388_p9), %vm508_vm0, %v452_v0  ;;  %1411 = vset.pattern.permute.xlu0 (!%p388_p9), %v1515_v1  ;;  %v460_v2 = vld [vmem:[%s1873_s4] sm:$0xff] (!%p388_p9)  ;;  %vm533_vm1 = vcmask (!%p388_p9), 1041408   ;;  %v461_v4 = vld [vmem:[%s1873_s4 + $0x8] sm:$0xff] (!%p388_p9)  ;;  %v463_v5 = vld [vmem:[%s1873_s4 + $0x18] sm:$0xff] (!%p388_p9) }
  0x13   : > { %s1173_s18 = sshll.u32 (!%p388_p9), %s1635_s15, 2  ;;  %1412 = vset.pattern.permute.xlu1 (!%p388_p9), %v1515_v1  ;;  %470 = vperm.xlu0 (!%p388_p9), %1411, %v460_v2   ;;  %v453_v7 = vld [vmem:[%s1872_s3 + $0x8] sm:$0xff] (!%p388_p9)  ;;  %v454_v8 = vld [vmem:[%s1872_s3 + $0x10] sm:$0xff] (!%p388_p9)  ;;  %v464_v9 = vld [vmem:[%s1873_s4 + $0x20] sm:$0xff] (!%p388_p9)  ;;  %vm706_vm2 = vcmask (!%p388_p9), 523264   ;;  %vm1517_vm3 = vmmov (!%p388_p9), 0  }
  0x14   : > { %480 = vperm.xlu1 (!%p388_p9), %1412, %v462_v3   ;;  %s1668_s14 = scalar_lea.vmem (!%p388_p9), [#allocation2], %s1173_s18  ;;  %v465_v10 = vld [vmem:[%s1873_s4 + $0x28] sm:$0xff] (!%p388_p9)  ;;  %v455_v11 = vld [vmem:[%s1872_s3 + $0x18] sm:$0xff] (!%p388_p9)  ;;  %v456_v12 = vld [vmem:[%s1872_s3 + $0x20] sm:$0xff] (!%p388_p9)  ;;  %s1196_s18 = sshll.u32 (!%p388_p9), %s1607_s25, 6 }
  0x15   : > { %v466_v13 = vld [vmem:[%s1873_s4 + $0x30] sm:$0xff] (!%p388_p9)  ;;  %v467_v14 = vld [vmem:[%s1873_s4 + $0x38] sm:$0xff] (!%p388_p9)  ;;  %v457_v15 = vld [vmem:[%s1872_s3 + $0x28] sm:$0xff] (!%p388_p9)  ;;  %s1048_s26 = sshll.u32 (!%p388_p9), %s1668_s14, 4  ;;  %s438_s28 = scalar_lea.vmem (!%p388_p9), [#allocation4], %s1635_s15  ;;  %s1798_s26 = int_to_ptr.vmem [resolvable:$true] %s1048_s26 }
  0x16   : > { %v458_v16 = vld [vmem:[%s1872_s3 + $0x30] sm:$0xff] (!%p388_p9)  ;;  %v658_v17 = vld [vmem:[%s1875_s6] sm:$0xff] (!%p388_p9)  ;;  %v659_v18 = vld [vmem:[%s1875_s6 + $0x8] sm:$0xff] (!%p388_p9)  ;;  %s1061_s29 = sshll.u32 (!%p388_p9), %s438_s28, 4  ;;  %s1805_s29 = int_to_ptr.vmem [resolvable:$true] %s1061_s29 }
  0x17   : > { %475 = vperm.xlu0 (!%p388_p9), %1411, %v461_v4   ;;  %v459_v19 = vld [vmem:[%s1872_s3 + $0x38] sm:$0xff] (!%p388_p9)  ;;  %v660_v20 = vld [vmem:[%s1875_s6 + $0x10] sm:$0xff] (!%p388_p9)  ;;  %v662_v22 = vld [vmem:[%s1875_s6 + $0x20] sm:$0xff] (!%p388_p9) }
  0x18   : > { %485 = vperm.xlu1 (!%p388_p9), %1412, %v463_v5   ;;  %v661_v21 = vld [vmem:[%s1875_s6 + $0x18] sm:$0xff] (!%p388_p9)  ;;  %v663_v23 = vld [vmem:[%s1875_s6 + $0x28] sm:$0xff] (!%p388_p9)  ;;  %v664_v24 = vld [vmem:[%s1875_s6 + $0x30] sm:$0xff] (!%p388_p9) }
  0x19   : > { %s1644_s19 = scalar_select %p439_p10, %s1607_s25, 1  ;;  %v665_v25 = vld [vmem:[%s1875_s6 + $0x38] sm:$0xff]  ;;  %v845_v26 = vld [vmem:[%s1877_s8] sm:$0x3]  ;;  %v651_v1 = vld [vmem:[%s1874_s5 + $0x8] sm:$0xff] }
  0x1a   : > { %v925_v27 = vld [vmem:[%s1879_s10] sm:$0x3]  ;;  %v652_v2 = vld [vmem:[%s1874_s5 + $0x10] sm:$0xff]  ;;  %v653_v3 = vld [vmem:[%s1874_s5 + $0x18] sm:$0xff] }
  0x1b   : > { %s1174_s16 = sshll.u32 %s1644_s19, 1  ;;  %490 = vperm.xlu0 %1411, %v464_v9   ;;  %v650_v28 = vld [vmem:[%s1874_s5] sm:$0xff]  ;;  %v655_v5 = vld [vmem:[%s1874_s5 + $0x28] sm:$0xff]  ;;  %v1518_v9 = vmov 0.0  }
  0x1c   : > { %s442_s20 = scalar_lea.vmem %s1869_s0, %s1174_s16  ;;  %495 = vperm.xlu1 %1412, %v465_v10   ;;  %1273 = vmatprep.mubr.msk.f32.mxu1 %vm706_vm2, %v650_v28  ;;  %v654_v4 = vld [vmem:[%s1874_s5 + $0x20] sm:$0xff]  ;;  %s446_s22 = scalar_lea.vmem %s1870_s1, %s1174_s16 }
  0x1d   : > { %v450_v6 = vld [vmem:[%s442_s20] sm:$0x3]  ;;  %s449_s20 = scalar_lea.vmem %s1871_s2, %s1644_s19  ;;  %s1197_s16 = sshll.u32 %s1607_s25, 4 }
  0x1e   : > { %1243 = vmatprep.subr.msk.mxu0 %vm533_vm1, %v450_v6  ;;  %1028 = vst [vmem:[%s1668_s14] sm:$0x3] %v450_v6  ;;  %s1796_s19 = scalar_lea.hbm %s1880_s11, %s1196_s18  ;;  %s1803_s27 = scalar_lea.hbm %s1881_s12, %s1197_s16 }
  0x1f   : > { %1244 = vmatpush3.msk.msra.mxu0 %vm533_vm1, %v450_v6  ;;  %500 = vperm.xlu0 %1411, %v466_v13   ;;  %v656_v6 = vld [vmem:[%s1874_s5 + $0x30] sm:$0xff]  ;;  %s1031_s25 = scalar_lea.sflag [#allocation3], %s1635_s15  ;;  %s1519_s18 = smov [#allocation2]  }
  0x20   : > { %1246 = vmatmul.mubr.msk.f32.vlgmr.msra.gmra.mrb[0].mxu0 %vm508_vm0, %v453_v7  ;;  %505 = vperm.xlu1 %1412, %v467_v14   ;;  %v657_v7 = vld [vmem:[%s1874_s5 + $0x38] sm:$0xff]  ;;  %s1423_s30 = sshll.u32 %s1519_s18, 4  ;;  %s1424_s30 = int_to_ptr.vmem [resolvable:$false] %s1423_s30 }
  0x21   : > { %1248 = vmatprep.mubr.msk.f32.mxu0 %vm508_vm0, %v454_v8  ;;  %v1516_v8 = vmov 0.0|0.0   ;;  %s1425_s17 = scalar_lea.vmem %s1424_s30, 128  ;;  %p1426_p0 = scmp.lt.s32.totalorder %s1798_s26, %s1424_s30 }
  0x22   : > { %1339 = vmatprep.subr.bf16.mxu0 %v1516_v8 }
  0x23   : > { %668 = vperm.xlu0 %1411, %v658_v17  }
  0x24   : > { %1249 = vmatmul.mubr.msk.f32.gmra.mrb[2].mxu0 %vm508_vm0, %v455_v11  ;;  %673 = vperm.xlu1 %1412, %v659_v18  }
  0x25   : > { %1251 = vmatprep.mubr.msk.f32.mxu0 %vm508_vm0, %v456_v12 }
  0x27   : > { %678 = vperm.xlu0 %1411, %v660_v20  }
  0x28   : > { %1252 = vmatmul.mubr.msk.f32.gmra.mrb[4].mxu0 %vm508_vm0, %v457_v15  ;;  %683 = vperm.xlu1 %1412, %v661_v21  }
  0x29   : > { %1254 = vmatprep.mubr.msk.f32.mxu0 %vm508_vm0, %v458_v16 }
  0x2b   : > { %688 = vperm.xlu0 %1411, %v662_v22  }
  0x2c   : > { %1255 = vmatmul.mubr.msk.f32.gmra.mrb[6].mxu0 %vm508_vm0, %v459_v19  ;;  %693 = vperm.xlu1 %1412, %v663_v23  }
  0x2d   : > { %1301 = vmatprep.mubr.msk.f32.mxu0 %vm1517_vm3, %v1518_v9 }
  0x2f   : > { %698 = vperm.xlu0 %1411, %v664_v24  }
  0x30   : > { %703 = vperm.xlu1 %1412, %v665_v25  }
  0x33   : > { %848 = vperm.xlu0 %1411, %v845_v26  }
  0x34   : > { %928 = vperm.xlu1 %1412, %v925_v27  }
  0x92   : > { %v471_v29 = vpop.permute.xlu0 %470 }
  0x93   : > { %v481_v30 = vpop.permute.xlu1 %480 }
  0x96   : > { %v476_v31 = vpop.permute.xlu0 %475 }
  0x97   : > { %v486_v32 = vpop.permute.xlu1 %485 }
  0x9a   : > { %v491_v45 = vpop.permute.xlu0 %490 }
  0x9b   : > { %v496_v42 = vpop.permute.xlu1 %495 }
  0x9e   : > { %v501_v57 = vpop.permute.xlu0 %500 }
  0x9f   : > { %v506_v54 = vpop.permute.xlu1 %505 }
  0xa2   : > { %v669_v11 = vpop.permute.xlu0 %668 }
  0xa3   : > { %v674_v10 = vpop.permute.xlu1 %673 }
  0xa6   : > { %v679_v14 = vpop.permute.xlu0 %678 }
  0xa7   : > { %v684_v12 = vpop.permute.xlu1 %683 }
  0xaa   : > { %v689_v26 = vpop.permute.xlu0 %688 }
  0xab   : > { %v694_v23 = vpop.permute.xlu1 %693 }
  0xf3   : > { %v1247_v33 = vpop.f32.mrb[0].mxu0 }
  0xf4   : > { %v609_v34 = vadd.f32 %v1247_v33, %v476_v31  ;;  %v603_v35 = vpop.f32.mrb[1].mxu0 }
  0xf5   : > { %v604_v36 = vadd.f32 %v603_v35, %v471_v29  ;;  %v704_v35 = vpop.permute.xlu1 %703 }
  0xf6   : > { %v643_v37 = vmax.f32 %v609_v34, 0.0 }
  0xf7   : > { %v642_v38 = vmax.f32 %v604_v36, 0.0  ;;  %v1250_v39 = vpop.f32.mrb[2].mxu0 }
  0xf8   : > { %v619_v40 = vadd.f32 %v1250_v39, %v486_v32  ;;  %v613_v41 = vpop.f32.mrb[3].mxu0 }
  0xf9   : > { %v614_v43 = vadd.f32 %v613_v41, %v481_v30  ;;  %v1323_v44 = vpack.c.bf16 %v643_v37, %v642_v38  ;;  %v699_v38 = vpop.permute.xlu0 %698 }
  0xfa   : > { %v645_v46 = vmax.f32 %v619_v40, 0.0 }
  0xfb   : > { %v644_v47 = vmax.f32 %v614_v43, 0.0  ;;  %v1253_v48 = vpop.f32.mrb[4].mxu0  ;;  %1324 = vmatprep.subr.bf16.mxu1 %v1323_v44 }
  0xfc   : > { %v629_v49 = vadd.f32 %v1253_v48, %v496_v42  ;;  %v623_v50 = vpop.f32.mrb[5].mxu0  ;;  %1326 = vmatpush3.bf16.msra.mxu1 %v1323_v44 }
  0xfd   : > { %v1327_v51 = vpack.c.bf16 %v645_v46, %v644_v47  ;;  %v624_v52 = vadd.f32 %v623_v50, %v491_v45  ;;  %v844_v46 = vld [vmem:[%s1876_s7] sm:$0x3]  ;;  %v849_v48 = vpop.permute.xlu0 %848 }
  0xfe   : > { %v647_v53 = vmax.f32 %v629_v49, 0.0  ;;  %v924_v47 = vld [vmem:[%s1878_s9] sm:$0x3] }
  0xff   : > { %v646_v55 = vmax.f32 %v624_v52, 0.0  ;;  %v1256_v56 = vpop.f32.mrb[6].mxu0  ;;  %1328 = vmatprep.subr.bf16.mxu1 %v1327_v51 }
 0x100   : > { %v639_v58 = vadd.f32 %v1256_v56, %v506_v54  ;;  %v633_v59 = vpop.f32.mrb[7].mxu0  ;;  %1330 = vmatpush3.bf16.msra.mxu1 %v1327_v51 }
 0x101   : > { %v1331_v60 = vpack.c.bf16 %v647_v53, %v646_v55  ;;  %v634_v61 = vadd.f32 %v633_v59, %v501_v57 }
 0x102   : > { %v649_v62 = vmax.f32 %v639_v58, 0.0 }
 0x103   : > { %v648_v63 = vmax.f32 %v634_v61, 0.0  ;;  %1332 = vmatprep.subr.bf16.mxu1 %v1331_v60 }
 0x104   : > { %1334 = vmatpush3.bf16.msra.mxu1 %v1331_v60 }
 0x105   : > { %v1335_v0 = vpack.c.bf16 %v649_v62, %v648_v63 }
 0x107   : > { %1336 = vmatprep.subr.bf16.mxu1 %v1335_v0 }
 0x108   : > { %1338 = vmatpush3.bf16.msra.mxu1 %v1335_v0 }
 0x109   : > { %1351 = vmatprep.subr.bf16.mxu1 %v1516_v8 }
 0x10b   : > { %1274 = vmatmul.mubr.msk.f32.vlgmr.msra.gmra.mrb[0].mxu1 %vm706_vm2, %v651_v1 }
 0x10c   : > { %1276 = vmatprep.mubr.msk.f32.mxu1 %vm706_vm2, %v652_v2 }
 0x10f   : > { %1277 = vmatmul.mubr.msk.f32.gmra.mrb[2].mxu1 %vm706_vm2, %v653_v3 }
 0x110   : > { %1279 = vmatprep.mubr.msk.f32.mxu1 %vm706_vm2, %v654_v4 }
 0x113   : > { %1280 = vmatmul.mubr.msk.f32.gmra.mrb[4].mxu1 %vm706_vm2, %v655_v5 }
 0x114   : > { %1282 = vmatprep.mubr.msk.f32.mxu1 %vm706_vm2, %v656_v6  ;;  %v451_v6 = vld [vmem:[%s446_s22] sm:$0x3] }
 0x117   : > { %1283 = vmatmul.mubr.msk.f32.gmra.mrb[6].mxu1 %vm706_vm2, %v657_v7 }
 0x118   : > { %1320 = vmatprep.mubr.msk.f32.mxu1 %vm1517_vm3, %v1518_v9  ;;  %v929_v9 = vpop.permute.xlu1 %928 }
 0x1de   : > { %v1275_v13 = vpop.f32.mrb[0].mxu1 }
 0x1df   : > { %v803_v15 = vadd.f32 %v1275_v13, %v674_v10  ;;  %v797_v16 = vpop.f32.mrb[1].mxu1  ;;  %v1021_v10 = vld [vmem:[%s449_s20] sm:$0x1]  ;;  %s1419_s20 = scalar_lea.vmem %s1798_s26, 64 }
 0x1e0   : > { %v798_v17 = vadd.f32 %v797_v16, %v669_v11  ;;  %p1420_p11 = scmp.ne.s32.totalorder %s1798_s26, %s1419_s20  ;;  %p1427_p1 = scmp.lt.s32.totalorder %s1425_s17, %s1419_s20 }
 0x1e1   : > { %v837_v18 = vmax.f32 %v803_v15, 0.0 }
 0x1e2   : > { %v836_v19 = vmax.f32 %v798_v17, 0.0  ;;  %v1278_v20 = vpop.f32.mrb[2].mxu1  ;;  %p1421_p12 = pnand %p1420_p11, %p1624_p5  ;;  %p1428_p2 = por %p1427_p1, %p1426_p0 }
 0x1e3   : > { %v813_v21 = vadd.f32 %v1278_v20, %v684_v12  ;;  %v807_v22 = vpop.f32.mrb[3].mxu1 }
 0x1e4   : > { %v1340_v24 = vpack.c.bf16 %v837_v18, %v836_v19  ;;  %v808_v25 = vadd.f32 %v807_v22, %v679_v14  ;;  %p1422_p13 = pneg %p1421_p12 }
 0x1e5   : > { %v839_v27 = vmax.f32 %v813_v21, 0.0 }
 0x1e6   : > { %v838_v28 = vmax.f32 %v808_v25, 0.0  ;;  %v1281_v29 = vpop.f32.mrb[4].mxu1  ;;  %1341 = vmatpush3.bf16.msra.mxu0 %v1340_v24  ;;  %1353 = vmatpush3.bf16.msra.mxu1 %v1340_v24  ;;  %p1429_p3 = pnand %p1428_p2, %p1422_p13 }
 0x1e7   : > { %v823_v30 = vadd.f32 %v1281_v29, %v694_v23  ;;  %v817_v31 = vpop.f32.mrb[5].mxu1  ;;  %1342 = vmatprep.subr.bf16.mxu0 %v1516_v8  ;;  %1354 = vmatprep.subr.bf16.mxu1 %v1516_v8 }
 0x1e8   : > { %v1343_v32 = vpack.c.bf16 %v839_v27, %v838_v28  ;;  %v818_v33 = vadd.f32 %v817_v31, %v689_v26 }
 0x1e9   : > { %v841_v34 = vmax.f32 %v823_v30, 0.0 }
 0x1ea   : > { %v840_v36 = vmax.f32 %v818_v33, 0.0  ;;  %v1284_v37 = vpop.f32.mrb[6].mxu1  ;;  %1344 = vmatpush3.bf16.msra.mxu0 %v1343_v32  ;;  %1356 = vmatpush3.bf16.msra.mxu1 %v1343_v32 }
 0x1eb   : > { %v833_v39 = vadd.f32 %v1284_v37, %v704_v35  ;;  %v827_v40 = vpop.f32.mrb[7].mxu1  ;;  %1345 = vmatprep.subr.bf16.mxu0 %v1516_v8  ;;  %1357 = vmatprep.subr.bf16.mxu1 %v1516_v8 }
 0x1ec   : > { %v1346_v41 = vpack.c.bf16 %v841_v34, %v840_v36  ;;  %v828_v42 = vadd.f32 %v827_v40, %v699_v38 }
 0x1ed   : > { %v843_v43 = vmax.f32 %v833_v39, 0.0 }
 0x1ee   : > { %v842_v44 = vmax.f32 %v828_v42, 0.0  ;;  %1347 = vmatpush3.bf16.msra.mxu0 %v1346_v41  ;;  %1359 = vmatpush3.bf16.msra.mxu1 %v1346_v41 }
 0x1ef   : > { %1348 = vmatprep.subr.bf16.mxu0 %v1516_v8  ;;  %1360 = vmatprep.subr.bf16.mxu1 %v1516_v8 }
 0x1f0   : > { %v1349_v45 = vpack.c.bf16 %v843_v43, %v842_v44 }
 0x1f2   : > { %1350 = vmatpush3.bf16.msra.mxu0 %v1349_v45  ;;  %1362 = vmatpush3.bf16.msra.mxu1 %v1349_v45 }
 0x1f5   : > { %1302 = vmatmul.mubr.msk.f32.vlgmr.msra.gmra.mrb[8].mxu0 %vm706_vm2, %v844_v46  ;;  %1321 = vmatmul.mubr.msk.f32.vlgmr.msra.gmra.mrb[8].mxu1 %vm706_vm2, %v924_v47 }
 0x2c8   : > { %v920_v49 = vpop.f32.mrb[8].mxu0  ;;  %v1000_v50 = vpop.f32.mrb[8].mxu1 }
 0x2c9   : > { %v921_v51 = vadd.f32 %v920_v49, %v849_v48  ;;  %v1303_v52 = vpop.f32.mrb[9].mxu0  ;;  %v1322_v53 = vpop.f32.mrb[9].mxu1  ;;  %v1001_v11 = vadd.f32 %v1000_v50, %v929_v9 }
 0x2cb   : > { %v1005_v54 = vand.u32 2147483647, %v921_v51  ;;  %v1004_v60 = vmin.f32 %v921_v51, 0.0 }
 0x2cd   : > { %v1006_v55 = vsub.f32 0.0, %v1005_v54 }
 0x2cf   : > { %v1007_v56 = vmul.f32 1.442695, %v1006_v55 }
 0x2d1   : > { %1413 = vpow2.f32 %v1007_v56 }
 0x2db   : > { %v1414_v57 = vpop.eup %1413 }
 0x2dc   : > { %v1009_v58 = vadd.f32 1.0, %v1414_v57 }
 0x2de   : > { %1415 = vlog2.f32 %v1009_v58 }
 0x2e8   : > { %v1416_v59 = vpop.eup %1415 }
 0x2e9   : > { %v1011_v61 = vmul.f32 0.6931472, %v1416_v59 }
 0x2eb   : > { %v1012_v62 = vsub.f32 %v1004_v60, %v1011_v61 }
 0x2ed   : > { %v1013_v63 = vsel %vm533_vm1, %v1012_v62, 0.0  ;;  %v1024_v0 = vmul.f32 1.442695, %v1012_v62 }
 0x2ee   : > { %v1014_v1 = vrot.slane %v1013_v63, 4 }
 0x2ef   : > { %1417 = vpow2.f32 %v1024_v0 }
 0x2f0   : > { %v1015_v2 = vadd.f32 %v1014_v1, %v1013_v63 }
 0x2f2   : > { %v1016_v3 = vrot.slane %v1015_v2, 2 }
 0x2f4   : > { %v1017_v4 = vadd.f32 %v1016_v3, %v1015_v2 }
 0x2f6   : > { %v1018_v5 = vrot.slane %v1017_v4, 1 }
 0x2f8   : > { %v1019_v7 = vadd.f32 %v1018_v5, %v1017_v4 }
 0x2f9   : > { %v1418_v8 = vpop.eup %1417 }
 0x2fa   : > { %v1026_v12 = vmul.f32 %v1418_v8, %v451_v6  ;;  %v1020_v13 = vsub.f32 0.0, %v1019_v7 }
 0x2fc   : > { %v1027_v14 = vadd.f32 %v1026_v12, %v1001_v11  ;;  %v1022_v15 = vadd.f32 %v1021_v10, %v1020_v13 }
 0x2fe   : > { %1029 = vst [vmem:[%s1668_s14 + $0x2] sm:$0x3] %v1027_v14  ;;  %1023 = vst [vmem:[%s438_s28] sm:$0x1] %v1022_v15 }
 0x2ff   : > { %1432 = shalt.err (!%p1429_p3)
}
 0x300   : > { %s1433_s14 = scalar_lea.hbm %s1796_s19, 64  ;;  %s1437_s22 = scalar_lea.hbm %s1880_s11, 128 }
 0x301   : > { %p1434_p4 = scmp.ne.s32.totalorder %s1796_s19, %s1433_s14  ;;  %p1438_p9 = scmp.lt.u32.totalorder %s1796_s19, %s1880_s11 }
 0x302   : > { %p1439_p10 = scmp.lt.u32.totalorder %s1437_s22, %s1433_s14  ;;  %p1441_p12 = scmp.lt.u32.totalorder %s1433_s14, %s1796_s19 }
 0x303   : > { %p1435_p7 = pnand %p1434_p4, %p1624_p5 }
 0x304   : > { %p1440_p11 = por %p1439_p10, %p1438_p9 }
 0x305   : > { %p1436_p8 = pneg %p1435_p7 }
 0x306   : > { %p1442_p13 = por %p1441_p12, %p1440_p11 }
 0x308   : > { %p1443_p0 = pnand %p1442_p13, %p1436_p8 }
 0x30a   : > { %1446 = shalt.err (!%p1443_p0)
}
 0x30b   : > { %1363 = dma.vmem_to_hbm [thread:$0]  (%p1624_p5), %s1798_s26, 64, %s1796_s19, %s1031_s25  }
 0x30c   : > { %s1036_s20 = scalar_lea.sflag [#allocation5], %s1635_s15  ;;  %s1447_s30 = scalar_lea.vmem %s1805_s29, 16 }
 0x30d   : > { %p1448_p1 = scmp.ne.s32.totalorder %s1805_s29, %s1447_s30  ;;  %s1520_s17 = smov [#allocation4]  }
 0x30e   : > { %s1451_s14 = sshll.u32 %s1520_s17, 4  ;;  %s1452_s14 = int_to_ptr.vmem [resolvable:$false] %s1451_s14 }
 0x30f   : > { %p1449_p2 = pnand %p1448_p1, %p1624_p5  ;;  %s1453_s16 = scalar_lea.vmem %s1452_s14, 32 }
 0x310   : > { %p1454_p4 = scmp.lt.s32.totalorder %s1805_s29, %s1452_s14  ;;  %p1455_p7 = scmp.lt.s32.totalorder %s1453_s16, %s1447_s30 }
 0x311   : > { %p1450_p3 = pneg %p1449_p2 }
 0x312   : > { %p1456_p8 = por %p1455_p7, %p1454_p4 }
 0x314   : > { %p1457_p9 = pnand %p1456_p8, %p1450_p3 }
 0x316   : > { %1460 = shalt.err (!%p1457_p9)
}
 0x317   : > { %s1461_s15 = scalar_lea.hbm %s1803_s27, 16  ;;  %s1465_s25 = scalar_lea.hbm %s1881_s12, 32 }
 0x318   : > { %p1462_p10 = scmp.ne.s32.totalorder %s1803_s27, %s1461_s15  ;;  %p1466_p13 = scmp.lt.u32.totalorder %s1803_s27, %s1881_s12 }
 0x319   : > { %p1467_p0 = scmp.lt.u32.totalorder %s1465_s25, %s1461_s15  ;;  %p1469_p2 = scmp.lt.u32.totalorder %s1461_s15, %s1803_s27 }
 0x31a   : > { %p1463_p11 = pnand %p1462_p10, %p1624_p5 }
 0x31b   : > { %p1468_p1 = por %p1467_p0, %p1466_p13 }
 0x31c   : > { %p1464_p12 = pneg %p1463_p11 }
 0x31d   : > { %p1470_p3 = por %p1469_p2, %p1468_p1 }
 0x31f   : > { %p1471_p4 = pnand %p1470_p3, %p1464_p12 }
 0x321   : > { %1474 = shalt.err (!%p1471_p4)
}
 0x322   : > { %1364 = dma.vmem_to_hbm [thread:$0]  (%p1624_p5), %s1805_s29, 16, %s1803_s27, %s1036_s20  }
 0x323 PF: > { %p1374_p7 = scmp.ge.s32.totalorder %s1513_s24, 2  ;;  %s1073_s18 = sand.u32 1, %s1501_s21  }
 0x324   : > { %s1074_s30 = scalar_lea.sflag [#allocation3], %s1073_s18 }
 0x325   : > { %p1368_p8 = pnand %p1374_p7, %p1628_p6 }
 0x327   : > { %1492 = dma.done.wait (!%p1368_p8), %s1074_s30, 64  }
 0x328   : > { %1494 = vsyncadd (!%p1368_p8), %s1074_s30, 4294967232  ;;  %s1083_s17 = scalar_lea.sflag [#allocation5], %s1073_s18 }
 0x329   : > { %1496 = dma.done.wait (!%p1368_p8), %s1083_s17, 16  }
 0x32a   : > { %1498 = vsyncadd (!%p1368_p8), %s1083_s17, 4294967280  ;;  %s1895_s24 = sld [smem:[#allocation10_spill]]  ;;  %s1896_s21 = sld [smem:[#allocation8_spill]] }
 0x32b   : > { %s1897_s22 = sld [smem:[#allocation9_spill]]  ;;  %s1898_s23 = sld [smem:[#allocation11_spill]] }
 0x330   : > { %p26_p5 = scmp.ge.s32.totalorder %s1895_s24, 4  }
 0x332   :  { %28 = sbr.rel (!%p26_p5) target bundleno = 5 (0x5), region = 122 }
 0x339   :  { %1087 = vsyncpa [#allocation3], 1 }
 0x33a   :  { %1089 = vsyncpa [#allocation3 + $0x1], 1 }
 0x33b   :  { %1090 = vsyncpa [#allocation5], 1 }
 0x33c   :  { %1092 = vsyncpa [#allocation5 + $0x1], 1 }

</bundles_post_ra>
